<compile_context>
chip_gen: v7x
topology: tpu7x:2x2x1
jax: 0.10.0
libtpu: 0.0.40
codegen_flags: <defaults>
</compile_context>

<pallas_src>
import functools

import jax
import jax.numpy as jnp
from jax.experimental import pallas as pl
from jax.experimental.pallas import tpu as pltpu

EPS = 1e-5  # nn.LayerNorm default


def _patch_merge_kernel(x_ref, w0_ref, w1_ref, b_ref, o_ref, *, rows, two_c, inv_k, eps):
    """One (row-tile, out-tile): fused 2x2 merge + LayerNorm + Linear.

    x_ref : (tr, 2, Wh, 2C)  raw input rows; dim 1 = h-offset (0/1); the last dim
                             holds the two w-offsets' channels back-to-back [w0|w1].
    w0_ref: (2C, tn)         gamma-folded weight rows for the h-even half ([x0|x2]).
    w1_ref: (2C, tn)         gamma-folded weight rows for the h-odd  half ([x1|x3]).
    b_ref : (1, tn)          beta @ W (f32).
    o_ref : (rows, tn)       rows = tr * Wh merged tokens, stored densely.
    """
    # Flatten so merged tokens map densely onto sublane rows (one relayout per
    # half, amortized over the whole tile; a no-op when Wh % 8 == 0).
    a0 = x_ref[:, 0, :, :].reshape(rows, two_c).astype(jnp.float32)  # [x0 | x2]
    a1 = x_ref[:, 1, :, :].reshape(rows, two_c).astype(jnp.float32)  # [x1 | x3]

    # One-pass LayerNorm statistics over the full 4C channels of each token.
    s = jnp.sum(a0, axis=-1, keepdims=True) + jnp.sum(a1, axis=-1, keepdims=True)
    ss = (jnp.sum(a0 * a0, axis=-1, keepdims=True)
          + jnp.sum(a1 * a1, axis=-1, keepdims=True))
    mean = s * inv_k
    var = ss * inv_k - mean * mean                # biased variance, like torch
    inv = jax.lax.rsqrt(var + eps)

    n0 = ((a0 - mean) * inv).astype(w0_ref.dtype)  # gamma/beta already folded
    n1 = ((a1 - mean) * inv).astype(w1_ref.dtype)

    acc = jnp.dot(n0, w0_ref[...], preferred_element_type=jnp.float32)
    acc = acc + jnp.dot(n1, w1_ref[...], preferred_element_type=jnp.float32)
    o_ref[...] = (acc + b_ref[...]).astype(o_ref.dtype)   # single dense store


@functools.partial(jax.jit, static_argnames=("input_resolution",))
def patch_merging(x, gamma, beta, weight, *, input_resolution):
    """
    x:      (B, H*W, C)
    gamma:  (4C,)          LayerNorm scale
    beta:   (4C,)          LayerNorm shift
    weight: (4C, out_dim)  (== torch reduction.weight.T)
    returns (B, H/2*W/2, out_dim)
    """
    H, W = input_resolution
    B, L, C = x.shape
    assert L == H * W, "input feature has wrong size"
    assert H % 2 == 0 and W % 2 == 0, f"x size ({H}*{W}) are not even."

    Hh, Wh = H // 2, W // 2
    S = B * Hh                    # "super rows": each holds Wh merged tokens
    M = S * Wh                    # total merged tokens
    K = 4 * C
    out_dim = weight.shape[1]

    # ---- free reshape (no data movement): (B, H*W, C) -> (S, 2, Wh, 2C) ----
    # xp[s, ho, ww, :] = [x[b, 2hh+ho, 2ww, :], x[b, 2hh+ho, 2ww+1, :]]
    xp = x.reshape(S, 2, Wh, 2 * C)

    # ---- host-side (tiny) parameter prep: fold gamma/beta, regroup rows, pad N ----
    w32 = weight.astype(jnp.float32) * gamma.astype(jnp.float32)[:, None]
    # torch concat order is [x0, x1, x2, x3]; the h-even half sees [x0 | x2],
    # the h-odd half sees [x1 | x3].
    w_h0 = jnp.concatenate([w32[0:C], w32[2 * C:3 * C]], axis=0)      # (2C, out)
    w_h1 = jnp.concatenate([w32[C:2 * C], w32[3 * C:4 * C]], axis=0)  # (2C, out)
    bias = (beta.astype(jnp.float32) @ weight.astype(jnp.float32))[None, :]

    n_pad = pl.cdiv(out_dim, 128) * 128          # lane-dense output stores
    if n_pad != out_dim:
        pad = ((0, 0), (0, n_pad - out_dim))
        w_h0 = jnp.pad(w_h0, pad)
        w_h1 = jnp.pad(w_h1, pad)
        bias = jnp.pad(bias, pad)
    w_h0 = w_h0.astype(weight.dtype)             # cast once here, never in-kernel
    w_h1 = w_h1.astype(weight.dtype)

    # ---- tile sizes from a VMEM budget (pipeline double-buffers I/O blocks) ----
    tn = n_pad if n_pad <= 512 else 512
    xb = jnp.dtype(x.dtype).itemsize
    wb = jnp.dtype(weight.dtype).itemsize

    per_row = (2 * K * xb        # input block (double buffered)
               + 2 * tn * xb     # output block (double buffered)
               + 3 * K * 4       # f32 temporaries (a0/a1 + normalized, reuse)
               + 2 * tn * 4)     # f32 accumulator
    fixed = 2 * (2 * (2 * C) * tn * wb) + 2 * tn * 4   # weight halves + bias (db)
    budget = 10 * 1024 * 1024
    rows_max = max(8, (budget - fixed) // per_row)

    if S <= 8:
        tr = S                                       # full-extent block: always legal
    else:
        tr = min(S, max(8, rows_max // Wh))
        tr = min(tr, ((pl.cdiv(S, 2) + 7) // 8) * 8)  # expose >=2 row tiles (megacore)
        tr = max(8, (tr // 8) * 8)                    # sublane-aligned output rows
        tr = min(tr, S)
    rows = tr * Wh
    grid = (pl.cdiv(S, tr), pl.cdiv(n_pad, tn))

    vmem_est = rows * per_row + fixed
    vmem_limit = int(min(max(2 * vmem_est, 32 * 1024 * 1024), 48 * 1024 * 1024))

    kernel = functools.partial(_patch_merge_kernel, rows=rows, two_c=2 * C,
                               inv_k=1.0 / K, eps=EPS)

    out = pl.pallas_call(
        kernel,
        out_shape=jax.ShapeDtypeStruct((M, n_pad), x.dtype),
        grid=grid,
        in_specs=[
            # x block index is constant along the out-dim axis -> no re-DMA per n.
            pl.BlockSpec((tr, 2, Wh, 2 * C), lambda i, n: (i, 0, 0, 0)),
            pl.BlockSpec((2 * C, tn), lambda i, n: (0, n)),
            pl.BlockSpec((2 * C, tn), lambda i, n: (0, n)),
            pl.BlockSpec((1, tn), lambda i, n: (0, n)),
        ],
        out_specs=pl.BlockSpec((rows, tn), lambda i, n: (i, n)),
        compiler_params=pltpu.CompilerParams(
            dimension_semantics=("parallel", "parallel"),
            vmem_limit_bytes=vmem_limit,
        ),
    )(xp, w_h0, w_h1, bias)

    out = out.reshape(B, Hh * Wh, n_pad)
    if n_pad != out_dim:
        out = out[..., :out_dim]
    return out


def _reference(x, gamma, beta, weight, input_resolution):
    """Pure-JAX reference mirroring the PyTorch module."""
    H, W = input_resolution
    B, L, C = x.shape
    xg = x.reshape(B, H, W, C)
    xm = jnp.concatenate(
        [xg[:, 0::2, 0::2, :], xg[:, 1::2, 0::2, :],
         xg[:, 0::2, 1::2, :], xg[:, 1::2, 1::2, :]], axis=-1
    ).reshape(B, -1, 4 * C).astype(jnp.float32)
    mean = jnp.mean(xm, axis=-1, keepdims=True)
    var = jnp.mean(jnp.square(xm - mean), axis=-1, keepdims=True)
    y = (xm - mean) * jax.lax.rsqrt(var + EPS) * gamma + beta
    return y @ weight.astype(jnp.float32)


if __name__ == "__main__":
    # Small config consistent with the module: C=32, H=W=16 -> L=256, out_dim=2C=64.
    B, H, W, C = 2, 16, 16, 32
    out_dim = 2 * C

    key = jax.random.PRNGKey(0)
    kx, kw, kg, kb = jax.random.split(key, 4)
    x = jax.random.normal(kx, (B, H * W, C), dtype=jnp.float32)
    weight = jax.random.normal(kw, (4 * C, out_dim), dtype=jnp.float32) * 0.02
    gamma = 1.0 + 0.1 * jax.random.normal(kg, (4 * C,), dtype=jnp.float32)
    beta = 0.1 * jax.random.normal(kb, (4 * C,), dtype=jnp.float32)

    out = patch_merging(x, gamma, beta, weight, input_resolution=(H, W))
    out = jax.block_until_ready(out)

    ref = _reference(x, gamma, beta, weight, (H, W))
    assert out.shape == (B, (H // 2) * (W // 2), out_dim), out.shape
    # Tolerance note: gamma/beta folding reorders the f32 accumulation and the
    # MXU's default f32 matmul path runs via bf16 passes, so tiny (~1e-3) drift
    # vs. the XLA reference is expected; semantic errors would be O(1).
    err = float(jnp.max(jnp.abs(out - ref)))
    assert err < 5e-3, err
    print("KERNEL_OK")
</pallas_src>

<mosaic_0001>
module attributes {stable_mosaic.version = 11 : i64} {
  func.func @_patch_merge_kernel(%arg0: i32, %arg1: i32, %arg2: memref<8x2x8x64xf32, #tpu.memory_space<vmem>>, %arg3: memref<64x128xf32, #tpu.memory_space<vmem>>, %arg4: memref<64x128xf32, #tpu.memory_space<vmem>>, %arg5: memref<1x128xf32, #tpu.memory_space<vmem>>, %arg6: memref<64x128xf32, #tpu.memory_space<vmem>>) attributes {dimension_semantics = [#tpu.dimension_semantics<parallel>, #tpu.dimension_semantics<parallel>], iteration_bounds = array<i64: 2, 1>, scalar_prefetch = 0 : i64, scratch_operands = 0 : i64, tpu.core_type = #tpu.core_type<tc>, window_params = [{transform_indices = @transform_0, window_bounds = array<i64: 8, 2, 8, 64>}, {transform_indices = @transform_1, window_bounds = array<i64: 64, 128>}, {transform_indices = @transform_2, window_bounds = array<i64: 64, 128>}, {transform_indices = @transform_3, window_bounds = array<i64: 1, 128>}, {transform_indices = @transform_4, window_bounds = array<i64: 64, 128>}]} {
    %c0 = arith.constant 0 : index
    %c0_0 = arith.constant 0 : index
    %c0_1 = arith.constant 0 : index
    %c0_2 = arith.constant 0 : index
    %0 = vector.load %arg2[%c0, %c0_0, %c0_1, %c0_2] : memref<8x2x8x64xf32, #tpu.memory_space<vmem>>, vector<8x1x8x64xf32>
    %1 = vector.shape_cast %0 : vector<8x1x8x64xf32> to vector<8x8x64xf32>
    %2 = vector.shape_cast %1 : vector<8x8x64xf32> to vector<64x64xf32>
    %c0_3 = arith.constant 0 : index
    %c1 = arith.constant 1 : index
    %c0_4 = arith.constant 0 : index
    %c0_5 = arith.constant 0 : index
    %3 = vector.load %arg2[%c0_3, %c1, %c0_4, %c0_5] : memref<8x2x8x64xf32, #tpu.memory_space<vmem>>, vector<8x1x8x64xf32>
    %4 = vector.shape_cast %3 : vector<8x1x8x64xf32> to vector<8x8x64xf32>
    %5 = vector.shape_cast %4 : vector<8x8x64xf32> to vector<64x64xf32>
    %cst = arith.constant dense<0.000000e+00> : vector<64xf32>
    %6 = vector.multi_reduction <add>, %2, %cst [1] : vector<64x64xf32> to vector<64xf32>
    %7 = vector.shape_cast %6 : vector<64xf32> to vector<64x1xf32>
    %cst_6 = arith.constant dense<0.000000e+00> : vector<64xf32>
    %8 = vector.multi_reduction <add>, %5, %cst_6 [1] : vector<64x64xf32> to vector<64xf32>
    %9 = vector.shape_cast %8 : vector<64xf32> to vector<64x1xf32>
    %10 = arith.addf %7, %9 : vector<64x1xf32>
    %11 = arith.mulf %2, %2 : vector<64x64xf32>
    %cst_7 = arith.constant dense<0.000000e+00> : vector<64xf32>
    %12 = vector.multi_reduction <add>, %11, %cst_7 [1] : vector<64x64xf32> to vector<64xf32>
    %13 = vector.shape_cast %12 : vector<64xf32> to vector<64x1xf32>
    %14 = arith.mulf %5, %5 : vector<64x64xf32>
    %cst_8 = arith.constant dense<0.000000e+00> : vector<64xf32>
    %15 = vector.multi_reduction <add>, %14, %cst_8 [1] : vector<64x64xf32> to vector<64xf32>
    %16 = vector.shape_cast %15 : vector<64xf32> to vector<64x1xf32>
    %17 = arith.addf %13, %16 : vector<64x1xf32>
    %cst_9 = arith.constant 7.812500e-03 : f32
    %18 = vector.broadcast %cst_9 : f32 to vector<64x1xf32>
    %19 = arith.mulf %10, %18 : vector<64x1xf32>
    %cst_10 = arith.constant 7.812500e-03 : f32
    %20 = vector.broadcast %cst_10 : f32 to vector<64x1xf32>
    %21 = arith.mulf %17, %20 : vector<64x1xf32>
    %22 = arith.mulf %19, %19 : vector<64x1xf32>
    %23 = arith.subf %21, %22 : vector<64x1xf32>
    %cst_11 = arith.constant 9.99999974E-6 : f32
    %24 = vector.broadcast %cst_11 : f32 to vector<64x1xf32>
    %25 = arith.addf %23, %24 : vector<64x1xf32>
    %26 = math.rsqrt %25 : vector<64x1xf32>
    %27 = vector.broadcast %19 : vector<64x1xf32> to vector<64x64xf32>
    %28 = arith.subf %2, %27 : vector<64x64xf32>
    %29 = vector.broadcast %26 : vector<64x1xf32> to vector<64x64xf32>
    %30 = arith.mulf %28, %29 : vector<64x64xf32>
    %31 = vector.broadcast %19 : vector<64x1xf32> to vector<64x64xf32>
    %32 = arith.subf %5, %31 : vector<64x64xf32>
    %33 = vector.broadcast %26 : vector<64x1xf32> to vector<64x64xf32>
    %34 = arith.mulf %32, %33 : vector<64x64xf32>
    %c0_12 = arith.constant 0 : index
    %c0_13 = arith.constant 0 : index
    %35 = vector.load %arg3[%c0_12, %c0_13] : memref<64x128xf32, #tpu.memory_space<vmem>>, vector<64x128xf32>
    %cst_14 = arith.constant dense<0.000000e+00> : vector<64x128xf32>
    %36 = tpu.matmul %30, %35, %cst_14 {dimension_numbers = #tpu.dot_dimension_numbers<[1], [0], [0], [1], [0, 0, 1, 1], [], []>} : vector<64x64xf32>, vector<64x128xf32>, vector<64x128xf32> -> vector<64x128xf32>
    %c0_15 = arith.constant 0 : index
    %c0_16 = arith.constant 0 : index
    %37 = vector.load %arg4[%c0_15, %c0_16] : memref<64x128xf32, #tpu.memory_space<vmem>>, vector<64x128xf32>
    %cst_17 = arith.constant dense<0.000000e+00> : vector<64x128xf32>
    %38 = tpu.matmul %34, %37, %cst_17 {dimension_numbers = #tpu.dot_dimension_numbers<[1], [0], [0], [1], [0, 0, 1, 1], [], []>} : vector<64x64xf32>, vector<64x128xf32>, vector<64x128xf32> -> vector<64x128xf32>
    %39 = arith.addf %36, %38 : vector<64x128xf32>
    %c0_18 = arith.constant 0 : index
    %c0_19 = arith.constant 0 : index
    %40 = vector.load %arg5[%c0_18, %c0_19] : memref<1x128xf32, #tpu.memory_space<vmem>>, vector<1x128xf32>
    %41 = vector.broadcast %40 : vector<1x128xf32> to vector<64x128xf32>
    %42 = arith.addf %39, %41 : vector<64x128xf32>
    %c0_20 = arith.constant 0 : index
    %c0_21 = arith.constant 0 : index
    %43 = vector.load %arg6[%c0_20, %c0_21] : memref<64x128xf32, #tpu.memory_space<vmem>>, vector<64x128xf32>
    tpu.vector_store %arg6[%c0_20, %c0_21], %42 {strides = array<i32>} : memref<64x128xf32, #tpu.memory_space<vmem>>, vector<64x128xf32>,
    return
  }
  func.func @transform_0(%arg0: i32, %arg1: i32) -> (i32, i32, i32, i32) {
    %c0_i32 = arith.constant 0 : i32
    %c0_i32_0 = arith.constant 0 : i32
    %c0_i32_1 = arith.constant 0 : i32
    %c0_i32_2 = arith.constant 0 : i32
    return %arg0, %c0_i32, %c0_i32_0, %c0_i32_1 : i32, i32, i32, i32
  }
  func.func @transform_1(%arg0: i32, %arg1: i32) -> (i32, i32) {
    %c0_i32 = arith.constant 0 : i32
    %c0_i32_0 = arith.constant 0 : i32
    return %c0_i32, %arg1 : i32, i32
  }
  func.func @transform_2(%arg0: i32, %arg1: i32) -> (i32, i32) {
    %c0_i32 = arith.constant 0 : i32
    %c0_i32_0 = arith.constant 0 : i32
    return %c0_i32, %arg1 : i32, i32
  }
  func.func @transform_3(%arg0: i32, %arg1: i32) -> (i32, i32) {
    %c0_i32 = arith.constant 0 : i32
    %c0_i32_0 = arith.constant 0 : i32
    return %c0_i32, %arg1 : i32, i32
  }
  func.func @transform_4(%arg0: i32, %arg1: i32) -> (i32, i32) {
    %c0_i32 = arith.constant 0 : i32
    return %arg0, %arg1 : i32, i32
  }
}

</mosaic_0001>

<bundles_post_ra>
// kernel: patch_merging.1
= control target key start
LH: loop header
LB: loop body
LE: loop exit
PB: predicated region body
PF: predicated region fallthrough
CT: control target
= control target key end

     0   :  { %9 = vsyncpa [#allocation3], 0  ;;  %s1611_s0 = inlined_call_operand.vmem [shape: f32[16,2,8,64], index: 0, kind: input, shape index: {}]   ;;  %s1612_s1 = inlined_call_operand.vmem [shape: f32[64,128], index: 1, kind: input, shape index: {}]   ;;  %s1613_s2 = inlined_call_operand.vmem [shape: f32[64,128], index: 2, kind: input, shape index: {}]   ;;  %s1614_s3 = inlined_call_operand.vmem [shape: f32[1,128], index: 3, kind: input, shape index: {}]   ;;  %s1615_s4 = inlined_call_operand.hbm [shape: f32[128,128], index: 4, kind: output, shape index: {}]  }
   0x1   :  { %11 = vsyncpa [#allocation3 + $0x1], 0  ;;  %s1269_s15 = smov 0   ;;  %s1271_s16 = smov 0  }
   0x2   :  { %s1273_s17 = smov 0   ;;  %s1275_s18 = smov 0  }
   0x3   :  { %s1277_s19 = smov 0   ;;  %s1279_s20 = smov 0  }
   0x4 LB: > { %s916_s21 = sadd.s32 4294967295, %s1239_s20   ;;  %s917_s22 = sadd.s32 4294967294, %s1239_s20   ;;  %s1239_s20 = sphi %s1279_s20, %s17_s20   ;;  %s1235_s19 = sphi %s1277_s19, %s1622_s19   ;;  %s1231_s18 = sphi %s1275_s18, %s1621_s18   ;;  %s1227_s17 = sphi %s1273_s17, %s1620_s17   ;;  %s1223_s16 = sphi %s1271_s16, %s1619_s16   ;;  %s1219_s15 = sphi %s1269_s15, %s1618_s15  }
   0x5   : > { %s29_s23 = sadd.s32 1, %s1235_s19  ;;  %s142_s24 = sadd.s32 1, %s1227_s17 }
   0x6   : > { %p31_p0 = scmp.ge.s32.totalorder %s29_s23, 2  ;;  %p152_p1 = scmp.ne.s32.totalorder %s1227_s17, %s1223_s16 }
   0x7   : > { %p153_p2 = scmp.eq.s32.totalorder %s916_s21, 1  ;;  %p158_p3 = scmp.ne.s32.totalorder %s1223_s16, %s1219_s15 }
   0x8   : > { %s1624_s23 = smov (%p31_p0, %s29_s23), 0  ;;  %p159_p5 = scmp.eq.s32.totalorder %s917_s22, 1 }
   0x9   : > { %p1309_p4 = por %p153_p2, %p152_p1  ;;  %s137_s26 = ssub.s32 %s1235_s19, %s1624_s23 }
   0xa   : > { %p923_p6 = scmp.ge.s32.totalorder %s1239_s20, 1  ;;  %p140_p7 = scmp.eq.s32.totalorder %s137_s26, 0 }
   0xb   : > { %p1316_p8 = por %p159_p5, %p158_p3  ;;  %p207_p9 = scmp.lt.s32.totalorder %s1239_s20, 3 }
   0xc   : > { %s1322_s28 = scalar_select %p140_p7, %s1227_s17, %s142_s24  }
   0xd   : > { %p208_p10 = pnand %p923_p6, %p207_p9 }
   0xe   : > { %s925_s29 = sshll.u32 (!%p208_p10), %s1231_s18, 3  ;;  %vm281_vm0 = vcmask (!%p208_p10), 523264   ;;  %v498_v36 = vld [vmem:[%s1613_s2] sm:$0xff] (!%p208_p10)  ;;  %v499_v37 = vld [vmem:[%s1613_s2 + $0x8] sm:$0xff] (!%p208_p10)  ;;  %v500_v48 = vld [vmem:[%s1613_s2 + $0x10] sm:$0xff] (!%p208_p10)  ;;  %s959_s14 = sshll.u32 (!%p208_p10), %s1231_s18, 10 }
   0xf   : > { %211 = sbr.rel (%p208_p10) target bundleno = 482 (0x1e2), region = 36  ;;  %p246_p11 = scmp.lt.s32.totalorder (!%p208_p10), %s925_s29, 15  ;;  %v490_v38 = vld [vmem:[%s1612_s1] sm:$0xff] (!%p208_p10)  ;;  %v1048_v41 = vpack.c.bf16 (!%p208_p10), %v499_v37, %v498_v36  ;;  %v491_v42 = vld [vmem:[%s1612_s1 + $0x8] sm:$0xff] (!%p208_p10)  ;;  %v501_v49 = vld [vmem:[%s1613_s2 + $0x18] sm:$0xff] (!%p208_p10) }
  0x10   : > { %v1064_v43 = vpack.c.bf16 (!%p208_p10), %v491_v42, %v490_v38  ;;  %v492_v50 = vld [vmem:[%s1612_s1 + $0x10] sm:$0xff] (!%p208_p10)  ;;  %v1052_v51 = vpack.c.bf16 (!%p208_p10), %v501_v49, %v500_v48  ;;  %v493_v52 = vld [vmem:[%s1612_s1 + $0x18] sm:$0xff] (!%p208_p10)  ;;  %v502_v58 = vld [vmem:[%s1613_s2 + $0x20] sm:$0xff] (!%p208_p10)  ;;  %s1557_s26 = scalar_lea.hbm (!%p208_p10), %s1615_s4, %s959_s14 }
  0x11   : > { %1049 = vmatprep.subr.bf16.mxu1 (!%p208_p10), %v1048_v41  ;;  %v1068_v53 = vpack.c.bf16 (!%p208_p10), %v493_v52, %v492_v50  ;;  %v503_v59 = vld [vmem:[%s1613_s2 + $0x28] sm:$0xff] (!%p208_p10)  ;;  %v494_v60 = vld [vmem:[%s1612_s1 + $0x20] sm:$0xff] (!%p208_p10) }
  0x12   : > { %1065 = vmatprep.subr.bf16.mxu0 (!%p208_p10), %v1064_v43  ;;  %1051 = vmatpush3.bf16.msra.mxu1 (!%p208_p10), %v1048_v41  ;;  %v1056_v61 = vpack.c.bf16 (!%p208_p10), %v503_v59, %v502_v58  ;;  %v495_v62 = vld [vmem:[%s1612_s1 + $0x28] sm:$0xff] (!%p208_p10) }
  0x13   : > { %1067 = vmatpush3.bf16.msra.mxu0 (!%p208_p10), %v1064_v43  ;;  %1053 = vmatprep.subr.bf16.mxu1 (!%p208_p10), %v1052_v51  ;;  %v1072_v63 = vpack.c.bf16 (!%p208_p10), %v495_v62, %v494_v60 }
  0x14   : > { %1069 = vmatprep.subr.bf16.mxu0 (!%p208_p10), %v1068_v53 }
  0x16   : > { %s1626_s29 = smov (!%p246_p11, %s925_s29), 15  ;;  %1055 = vmatpush3.bf16.msra.mxu1 %v1052_v51 }
  0x17   : > { %s958_s30 = sshll.u32 %s1626_s29, 4  ;;  %1071 = vmatpush3.bf16.msra.mxu0 %v1068_v53  ;;  %1057 = vmatprep.subr.bf16.mxu1 %v1056_v61 }
  0x18   : > { %s1328_s7 = scalar_lea.vmem %s1611_s0, %s958_s30  ;;  %1073 = vmatprep.subr.bf16.mxu0 %v1072_v63  ;;  %s1241_s30 = smov [#allocation2]  }
  0x19   : > { %v1331_v0 = vld [vmem:[%s1328_s7 + $0x10] sm:$0xff]  ;;  %v1334_v1 = vld [vmem:[%s1328_s7] sm:$0xff]  ;;  %v1337_v2 = vld [vmem:[%s1328_s7 + $0x18] sm:$0xff]  ;;  %s1165_s5 = sshll.u32 %s1241_s30, 4  ;;  %s1166_s5 = int_to_ptr.vmem [resolvable:$false] %s1165_s5 }
  0x1a   : > { %v285_v3 = vsel %vm281_vm0, %v1331_v0, 0.0  ;;  %v282_v4 = vsel %vm281_vm0, %v1334_v1, 0.0  ;;  %v1344_v5 = vld [vmem:[%s1328_s7 + $0x8] sm:$0xff]  ;;  %v309_v6 = vsel %vm281_vm0, %v1337_v2, 0.0  ;;  %v338_v9 = vmul.f32 %v1334_v1, %v1334_v1  ;;  %v1366_v17 = vld [vmem:[%s1328_s7 + $0x20] sm:$0xff]  ;;  %v1373_v20 = vld [vmem:[%s1328_s7 + $0x38] sm:$0xff]  ;;  %1059 = vmatpush3.bf16.msra.mxu1 %v1056_v61 }
  0x1b   : > { %286 = vadd.xlane.f32.xlu1 %v285_v3  ;;  %283 = vadd.xlane.f32.xlu0 %v282_v4  ;;  %v306_v7 = vsel %vm281_vm0, %v1344_v5, 0.0  ;;  %v370_v8 = vmul.f32 %v1344_v5, %v1344_v5  ;;  %v371_v12 = vmul.f32 %v1337_v2, %v1337_v2  ;;  %v339_v13 = vmul.f32 %v1331_v0, %v1331_v0  ;;  %v1363_v16 = vld [vmem:[%s1328_s7 + $0x28] sm:$0xff]  ;;  %v1376_v21 = vld [vmem:[%s1328_s7 + $0x30] sm:$0xff]  ;;  %v1398_v33 = vld [vmem:[%s1328_s7 + $0x40] sm:$0xff]  ;;  %s1167_s6 = scalar_lea.vmem %s1166_s5, 2048 }
  0x1c   : > { %v346_v11 = vsel %vm281_vm0, %v338_v9, 0.0  ;;  %v312_v18 = vsel %vm281_vm0, %v1363_v16, 0.0  ;;  %v288_v19 = vsel %vm281_vm0, %v1366_v17, 0.0  ;;  %v315_v22 = vsel %vm281_vm0, %v1373_v20, 0.0  ;;  %v1395_v32 = vld [vmem:[%s1328_s7 + $0x48] sm:$0xff]  ;;  %v1414_v39 = vld [vmem:[%s1328_s7 + $0x58] sm:$0xff]  ;;  %1075 = vmatpush3.bf16.msra.mxu0 %v1072_v63 }
  0x1d   : > { %v378_v10 = vsel %vm281_vm0, %v370_v8, 0.0  ;;  %v381_v14 = vsel %vm281_vm0, %v371_v12, 0.0  ;;  %v349_v15 = vsel %vm281_vm0, %v339_v13, 0.0  ;;  %v291_v23 = vsel %vm281_vm0, %v1376_v21, 0.0  ;;  %v1417_v40 = vld [vmem:[%s1328_s7 + $0x50] sm:$0xff]  ;;  %v1472_v9 = vld [vmem:[%s1328_s7 + $0x68] sm:$0xff] }
  0x1e   : > { %v372_v24 = vmul.f32 %v1363_v16, %v1363_v16  ;;  %v340_v25 = vmul.f32 %v1366_v17, %v1366_v17  ;;  %v373_v28 = vmul.f32 %v1373_v20, %v1373_v20  ;;  %v341_v29 = vmul.f32 %v1376_v21, %v1376_v21  ;;  %v496_v8 = vld [vmem:[%s1612_s1 + $0x30] sm:$0xff]  ;;  %v497_v12 = vld [vmem:[%s1612_s1 + $0x38] sm:$0xff] }
  0x1f   : > { %310 = vadd.xlane.f32.xlu1 %v309_v6  ;;  %307 = vadd.xlane.f32.xlu0 %v306_v7  ;;  %v318_v34 = vsel %vm281_vm0, %v1395_v32, 0.0  ;;  %v294_v35 = vsel %vm281_vm0, %v1398_v33, 0.0  ;;  %v321_v44 = vsel %vm281_vm0, %v1414_v39, 0.0  ;;  %v297_v45 = vsel %vm281_vm0, %v1417_v40, 0.0  ;;  %v504_v6 = vld [vmem:[%s1613_s2 + $0x30] sm:$0xff]  ;;  %v505_v7 = vld [vmem:[%s1613_s2 + $0x38] sm:$0xff] }
  0x20   : > { %v384_v26 = vsel %vm281_vm0, %v372_v24, 0.0  ;;  %v352_v27 = vsel %vm281_vm0, %v340_v25, 0.0  ;;  %v387_v30 = vsel %vm281_vm0, %v373_v28, 0.0  ;;  %v355_v31 = vsel %vm281_vm0, %v341_v29, 0.0 }
  0x21   : > { %v374_v46 = vmul.f32 %v1395_v32, %v1395_v32  ;;  %v342_v47 = vmul.f32 %v1398_v33, %v1398_v33  ;;  %v375_v56 = vmul.f32 %v1414_v39, %v1414_v39  ;;  %v343_v57 = vmul.f32 %v1417_v40, %v1417_v40 }
  0x22   : > { %v1076_v13 = vpack.c.bf16 %v497_v12, %v496_v8  ;;  %v376_v24 = vmul.f32 %v1472_v9, %v1472_v9 }
  0x23   : > { %379 = vadd.xlane.f32.xlu1 %v378_v10  ;;  %347 = vadd.xlane.f32.xlu0 %v346_v11  ;;  %v390_v54 = vsel %vm281_vm0, %v374_v46, 0.0  ;;  %v358_v55 = vsel %vm281_vm0, %v342_v47, 0.0  ;;  %v393_v3 = vsel %vm281_vm0, %v375_v56, 0.0  ;;  %v361_v4 = vsel %vm281_vm0, %v343_v57, 0.0  ;;  %v1475_v10 = vld [vmem:[%s1328_s7 + $0x60] sm:$0xff] }
  0x24   : > { %v1060_v11 = vpack.c.bf16 %v505_v7, %v504_v6  ;;  %1077 = vmatprep.subr.bf16.mxu0 %v1076_v13  ;;  %v344_v25 = vmul.f32 %v1475_v10, %v1475_v10 }
  0x25   : > { %1079 = vmatpush3.bf16.msra.mxu0 %v1076_v13 }
  0x26   : > { %1061 = vmatprep.subr.bf16.mxu1 %v1060_v11 }
  0x27   : > { %382 = vadd.xlane.f32.xlu1 %v381_v14  ;;  %350 = vadd.xlane.f32.xlu0 %v349_v15  ;;  %v324_v14 = vsel %vm281_vm0, %v1472_v9, 0.0  ;;  %v300_v15 = vsel %vm281_vm0, %v1475_v10, 0.0 }
  0x28   : > { %1063 = vmatpush3.bf16.msra.mxu1 %v1060_v11 }
  0x2b   : > { %313 = vadd.xlane.f32.xlu1 %v312_v18  ;;  %289 = vadd.xlane.f32.xlu0 %v288_v19  ;;  %v1485_v18 = vld [vmem:[%s1328_s7 + $0x78] sm:$0xff]  ;;  %v1488_v19 = vld [vmem:[%s1328_s7 + $0x70] sm:$0xff]  ;;  %s242_s7 = sand.u32 1, %s1223_s16  }
  0x2c   : > { %v377_v28 = vmul.f32 %v1485_v18, %v1485_v18  ;;  %v345_v29 = vmul.f32 %v1488_v19, %v1488_v19  ;;  %s924_s10 = sshll.u32 %s242_s7, 6  ;;  %s1565_s18 = scalar_lea.sflag [#allocation3], %s242_s7 }
  0x2d   : > { %s1544_s13 = scalar_lea.vmem [#allocation2], %s924_s10 }
  0x2e   : > { %s802_s21 = sshll.u32 %s1544_s13, 4  ;;  %s1559_s21 = int_to_ptr.vmem [resolvable:$true] %s802_s21 }
  0x2f   : > { %316 = vadd.xlane.f32.xlu1 %v315_v22  ;;  %292 = vadd.xlane.f32.xlu0 %v291_v23  ;;  %v327_v22 = vsel %vm281_vm0, %v1485_v18, 0.0  ;;  %v303_v23 = vsel %vm281_vm0, %v1488_v19, 0.0  ;;  %s1161_s29 = scalar_lea.vmem %s1559_s21, 1024  ;;  %p1168_p1 = scmp.lt.s32.totalorder %s1559_s21, %s1166_s5 }
  0x30   : > { %p1162_p12 = scmp.ne.s32.totalorder %s1559_s21, %s1161_s29  ;;  %p1169_p2 = scmp.lt.s32.totalorder %s1167_s6, %s1161_s29 }
  0x32   : > { %p1163_p13 = pnand %p1162_p12, %p1309_p4  ;;  %p1170_p3 = por %p1169_p2, %p1168_p1 }
  0x33   : > { %385 = vadd.xlane.f32.xlu1 %v384_v26  ;;  %353 = vadd.xlane.f32.xlu0 %v352_v27  ;;  %v396_v26 = vsel %vm281_vm0, %v376_v24, 0.0  ;;  %v364_v27 = vsel %vm281_vm0, %v344_v25, 0.0 }
  0x34   : > { %p1164_p0 = pneg %p1163_p13 }
  0x36   : > { %p1171_p5 = pnand %p1170_p3, %p1164_p0 }
  0x37   : > { %388 = vadd.xlane.f32.xlu1 %v387_v30  ;;  %356 = vadd.xlane.f32.xlu0 %v355_v31  ;;  %v399_v30 = vsel %vm281_vm0, %v377_v28, 0.0  ;;  %v367_v31 = vsel %vm281_vm0, %v345_v29, 0.0 }
  0x3b   : > { %319 = vadd.xlane.f32.xlu1 %v318_v34  ;;  %295 = vadd.xlane.f32.xlu0 %v294_v35 }
  0x3f   : > { %322 = vadd.xlane.f32.xlu1 %v321_v44  ;;  %298 = vadd.xlane.f32.xlu0 %v297_v45 }
  0x43   : > { %391 = vadd.xlane.f32.xlu1 %v390_v54  ;;  %359 = vadd.xlane.f32.xlu0 %v358_v55 }
  0x47   : > { %394 = vadd.xlane.f32.xlu1 %v393_v3  ;;  %362 = vadd.xlane.f32.xlu0 %v361_v4 }
  0x4b   : > { %325 = vadd.xlane.f32.xlu1 %v324_v14  ;;  %301 = vadd.xlane.f32.xlu0 %v300_v15 }
  0x4f   : > { %328 = vadd.xlane.f32.xlu1 %v327_v22  ;;  %304 = vadd.xlane.f32.xlu0 %v303_v23 }
  0x53   : > { %397 = vadd.xlane.f32.xlu1 %v396_v26  ;;  %365 = vadd.xlane.f32.xlu0 %v364_v27 }
  0x57   : > { %400 = vadd.xlane.f32.xlu1 %v399_v30  ;;  %368 = vadd.xlane.f32.xlu0 %v367_v31 }
  0xa8   : > { %v287_v34 = vpop.xlane.xlu1 %286  ;;  %v284_v35 = vpop.xlane.xlu0 %283 }
  0xac   : > { %v311_v36 = vpop.xlane.xlu1 %310  ;;  %v308_v37 = vpop.xlane.xlu0 %307 }
  0xad   : > { %v330_v38 = vadd.f32 %v308_v37, %v284_v35  ;;  %v331_v41 = vadd.f32 %v311_v36, %v287_v34 }
  0xaf   : > { %v410_v42 = vmul.f32 0.0078125, %v330_v38  ;;  %v411_v46 = vmul.f32 0.0078125, %v331_v41 }
  0xb0   : > { %v380_v43 = vpop.xlane.xlu1 %379  ;;  %v348_v44 = vpop.xlane.xlu0 %347 }
  0xb1   : > { %v402_v45 = vadd.f32 %v380_v43, %v348_v44  ;;  %v426_v47 = vmul.f32 %v410_v42, %v410_v42  ;;  %v427_v54 = vmul.f32 %v411_v46, %v411_v46  ;;  %v474_v8 = vsub.f32 %v1344_v5, %v410_v42 }
  0xb2   : > { %v458_v11 = vsub.f32 %v1334_v1, %v410_v42  ;;  %v459_v28 = vsub.f32 %v1331_v0, %v411_v46  ;;  %v475_v29 = vsub.f32 %v1337_v2, %v411_v46 }
  0xb3   : > { %v418_v48 = vmul.f32 0.0078125, %v402_v45 }
  0xb4   : > { %v383_v49 = vpop.xlane.xlu1 %382  ;;  %v351_v50 = vpop.xlane.xlu0 %350 }
  0xb5   : > { %v434_v51 = vsub.f32 %v418_v48, %v426_v47  ;;  %v403_v52 = vadd.f32 %v383_v49, %v351_v50 }
  0xb7   : > { %v442_v53 = vadd.f32 1e-05, %v434_v51  ;;  %v419_v55 = vmul.f32 0.0078125, %v403_v52 }
  0xb8   : > { %v314_v56 = vpop.xlane.xlu1 %313  ;;  %v290_v57 = vpop.xlane.xlu0 %289 }
  0xb9   : > { %1145 = vrsqrt.f32 %v442_v53  ;;  %v435_v58 = vsub.f32 %v419_v55, %v427_v54  ;;  %v332_v60 = vadd.f32 %v314_v56, %v290_v57 }
  0xbb   : > { %v443_v59 = vadd.f32 1e-05, %v435_v58  ;;  %v412_v63 = vmul.f32 0.0078125, %v332_v60 }
  0xbc   : > { %v317_v61 = vpop.xlane.xlu1 %316  ;;  %v293_v62 = vpop.xlane.xlu0 %292 }
  0xbd   : > { %1147 = vrsqrt.f32 %v443_v59  ;;  %v333_v3 = vadd.f32 %v317_v61, %v293_v62  ;;  %v428_v14 = vmul.f32 %v412_v63, %v412_v63  ;;  %v460_v48 = vsub.f32 %v1366_v17, %v412_v63 }
  0xbe   : > { %v476_v49 = vsub.f32 %v1363_v16, %v412_v63 }
  0xbf   : > { %v413_v13 = vmul.f32 0.0078125, %v333_v3 }
  0xc0   : > { %v386_v4 = vpop.xlane.xlu1 %385  ;;  %v354_v6 = vpop.xlane.xlu0 %353 }
  0xc1   : > { %v404_v7 = vadd.f32 %v386_v4, %v354_v6  ;;  %v429_v30 = vmul.f32 %v413_v13, %v413_v13  ;;  %v461_v60 = vsub.f32 %v1376_v21, %v413_v13  ;;  %v477_v61 = vsub.f32 %v1373_v20, %v413_v13 }
  0xc3   : > { %v1146_v12 = vpop.eup %1145  ;;  %v420_v15 = vmul.f32 0.0078125, %v404_v7 }
  0xc4   : > { %v389_v22 = vpop.xlane.xlu1 %388  ;;  %v357_v23 = vpop.xlane.xlu0 %356  ;;  %v482_v24 = vmul.f32 %v1146_v12, %v474_v8  ;;  %v466_v25 = vmul.f32 %v1146_v12, %v458_v11 }
  0xc5   : > { %v436_v26 = vsub.f32 %v420_v15, %v428_v14  ;;  %v405_v27 = vadd.f32 %v389_v22, %v357_v23 }
  0xc6   : > { %1008 = vmatprep.mubr.msk.f32.mxu1 %vm281_vm0, %v482_v24  ;;  %1036 = vmatprep.mubr.msk.f32.mxu0 %vm281_vm0, %v466_v25 }
  0xc7   : > { %v1148_v5 = vpop.eup %1147  ;;  %v444_v1 = vadd.f32 1e-05, %v436_v26  ;;  %v421_v31 = vmul.f32 0.0078125, %v405_v27 }
  0xc8   : > { %v320_v34 = vpop.xlane.xlu1 %319  ;;  %v296_v35 = vpop.xlane.xlu0 %295  ;;  %v483_v36 = vmul.f32 %v1148_v5, %v475_v29  ;;  %v467_v37 = vmul.f32 %v1148_v5, %v459_v28 }
  0xc9   : > { %1149 = vrsqrt.f32 %v444_v1  ;;  %v437_v38 = vsub.f32 %v421_v31, %v429_v30  ;;  %v334_v2 = vadd.f32 %v320_v34, %v296_v35 }
  0xca   : > { %1009 = vmatmul.mubr.msk.f32.vlgmr.msra.gmra.mrb[0].mxu1 %vm281_vm0, %v483_v36  ;;  %1037 = vmatmul.mubr.msk.f32.vlgmr.msra.gmra.mrb[0].mxu0 %vm281_vm0, %v467_v37 }
  0xcb   : > { %v445_v0 = vadd.f32 1e-05, %v437_v38  ;;  %v414_v43 = vmul.f32 0.0078125, %v334_v2 }
  0xcc   : > { %v323_v41 = vpop.xlane.xlu1 %322  ;;  %v299_v42 = vpop.xlane.xlu0 %298 }
  0xcd   : > { %1151 = vrsqrt.f32 %v445_v0  ;;  %v335_v44 = vadd.f32 %v323_v41, %v299_v42  ;;  %v430_v52 = vmul.f32 %v414_v43, %v414_v43  ;;  %v462_v24 = vsub.f32 %v1398_v33, %v414_v43 }
  0xce   : > { %v478_v25 = vsub.f32 %v1395_v32, %v414_v43 }
  0xcf   : > { %v415_v51 = vmul.f32 0.0078125, %v335_v44 }
  0xd0   : > { %v392_v45 = vpop.xlane.xlu1 %391  ;;  %v360_v46 = vpop.xlane.xlu0 %359 }
  0xd1   : > { %v406_v47 = vadd.f32 %v392_v45, %v360_v46  ;;  %v431_v62 = vmul.f32 %v415_v51, %v415_v51  ;;  %v463_v36 = vsub.f32 %v1417_v40, %v415_v51  ;;  %v479_v37 = vsub.f32 %v1414_v39, %v415_v51 }
  0xd3   : > { %v1150_v50 = vpop.eup %1149  ;;  %v422_v53 = vmul.f32 0.0078125, %v406_v47 }
  0xd4   : > { %v395_v54 = vpop.xlane.xlu1 %394  ;;  %v363_v55 = vpop.xlane.xlu0 %362  ;;  %v484_v56 = vmul.f32 %v1150_v50, %v476_v49  ;;  %v468_v57 = vmul.f32 %v1150_v50, %v460_v48 }
  0xd5   : > { %v438_v58 = vsub.f32 %v422_v53, %v430_v52  ;;  %v407_v59 = vadd.f32 %v395_v54, %v363_v55 }
  0xd6   : > { %1011 = vmatprep.mubr.msk.f32.mxu1 %vm281_vm0, %v484_v56  ;;  %1039 = vmatprep.mubr.msk.f32.mxu0 %vm281_vm0, %v468_v57 }
  0xd7   : > { %v1152_v17 = vpop.eup %1151  ;;  %v446_v16 = vadd.f32 1e-05, %v438_v58  ;;  %v423_v63 = vmul.f32 0.0078125, %v407_v59 }
  0xd8   : > { %v326_v3 = vpop.xlane.xlu1 %325  ;;  %v302_v4 = vpop.xlane.xlu0 %301  ;;  %v485_v6 = vmul.f32 %v1152_v17, %v477_v61  ;;  %v469_v7 = vmul.f32 %v1152_v17, %v461_v60 }
  0xd9   : > { %1153 = vrsqrt.f32 %v446_v16  ;;  %v439_v8 = vsub.f32 %v423_v63, %v431_v62  ;;  %v336_v20 = vadd.f32 %v326_v3, %v302_v4 }
  0xda   : > { %1012 = vmatmul.mubr.msk.f32.gmra.mrb[2].mxu1 %vm281_vm0, %v485_v6  ;;  %1040 = vmatmul.mubr.msk.f32.gmra.mrb[2].mxu0 %vm281_vm0, %v469_v7 }
  0xdb   : > { %v447_v21 = vadd.f32 1e-05, %v439_v8  ;;  %v416_v13 = vmul.f32 0.0078125, %v336_v20 }
  0xdc   : > { %v329_v11 = vpop.xlane.xlu1 %328  ;;  %v305_v12 = vpop.xlane.xlu0 %304 }
  0xdd   : > { %1155 = vrsqrt.f32 %v447_v21  ;;  %v337_v14 = vadd.f32 %v329_v11, %v305_v12  ;;  %v432_v28 = vmul.f32 %v416_v13, %v416_v13  ;;  %v464_v39 = vsub.f32 %v1475_v10, %v416_v13 }
  0xde   : > { %v480_v40 = vsub.f32 %v1472_v9, %v416_v13 }
  0xdf   : > { %v417_v27 = vmul.f32 0.0078125, %v337_v14 }
  0xe0   : > { %v398_v15 = vpop.xlane.xlu1 %397  ;;  %v366_v22 = vpop.xlane.xlu0 %365 }
  0xe1   : > { %v408_v23 = vadd.f32 %v398_v15, %v366_v22  ;;  %v433_v38 = vmul.f32 %v417_v27, %v417_v27  ;;  %v465_v47 = vsub.f32 %v1488_v19, %v417_v27  ;;  %v481_v48 = vsub.f32 %v1485_v18, %v417_v27  ;;  %v952_v18 = vld [vmem:[%s1614_s3] ss:$0 sm:$0xff] }
  0xe3   : > { %v1154_v26 = vpop.eup %1153  ;;  %v424_v29 = vmul.f32 0.0078125, %v408_v23 }
  0xe4   : > { %v401_v5 = vpop.xlane.xlu1 %400  ;;  %v369_v1 = vpop.xlane.xlu0 %368  ;;  %v486_v30 = vmul.f32 %v1154_v26, %v478_v25  ;;  %v470_v31 = vmul.f32 %v1154_v26, %v462_v24 }
  0xe5   : > { %v440_v34 = vsub.f32 %v424_v29, %v432_v28  ;;  %v409_v35 = vadd.f32 %v401_v5, %v369_v1 }
  0xe6   : > { %1014 = vmatprep.mubr.msk.f32.mxu1 %vm281_vm0, %v486_v30  ;;  %1042 = vmatprep.mubr.msk.f32.mxu0 %vm281_vm0, %v470_v31 }
  0xe7   : > { %v1156_v33 = vpop.eup %1155  ;;  %v448_v32 = vadd.f32 1e-05, %v440_v34  ;;  %v425_v0 = vmul.f32 0.0078125, %v409_v35 }
  0xe8   : > { %v487_v2 = vmul.f32 %v1156_v33, %v479_v37  ;;  %v471_v41 = vmul.f32 %v1156_v33, %v463_v36 }
  0xe9   : > { %1157 = vrsqrt.f32 %v448_v32  ;;  %v441_v42 = vsub.f32 %v425_v0, %v433_v38 }
  0xea   : > { %1015 = vmatmul.mubr.msk.f32.gmra.mrb[4].mxu1 %vm281_vm0, %v487_v2  ;;  %1043 = vmatmul.mubr.msk.f32.gmra.mrb[4].mxu0 %vm281_vm0, %v471_v41 }
  0xeb   : > { %v449_v43 = vadd.f32 1e-05, %v441_v42 }
  0xed   : > { %1159 = vrsqrt.f32 %v449_v43 }
  0xf3   : > { %v1158_v44 = vpop.eup %1157 }
  0xf4   : > { %v488_v45 = vmul.f32 %v1158_v44, %v480_v40  ;;  %v472_v46 = vmul.f32 %v1158_v44, %v464_v39 }
  0xf6   : > { %1017 = vmatprep.mubr.msk.f32.mxu1 %vm281_vm0, %v488_v45  ;;  %1045 = vmatprep.mubr.msk.f32.mxu0 %vm281_vm0, %v472_v46 }
  0xf7   : > { %v1160_v49 = vpop.eup %1159 }
  0xf8   : > { %v489_v50 = vmul.f32 %v1160_v49, %v481_v48  ;;  %v473_v51 = vmul.f32 %v1160_v49, %v465_v47 }
  0xfa   : > { %1018 = vmatmul.mubr.msk.f32.gmra.mrb[6].mxu1 %vm281_vm0, %v489_v50  ;;  %1046 = vmatmul.mubr.msk.f32.gmra.mrb[6].mxu0 %vm281_vm0, %v473_v51 }
 0x19d   : > { %v1010_v9 = vpop.f32.mrb[0].mxu1  ;;  %v1038_v10 = vpop.f32.mrb[0].mxu0 }
 0x19e   : > { %v731_v19 = vadd.f32 %v1038_v10, %v1010_v9  ;;  %v596_v52 = vpop.f32.mrb[1].mxu1  ;;  %v725_v53 = vpop.f32.mrb[1].mxu0 }
 0x19f   : > { %v726_v54 = vadd.f32 %v725_v53, %v596_v52 }
 0x1a0   : > { %v772_v55 = vadd.f32 %v952_v18, %v731_v19 }
 0x1a1   : > { %v771_v56 = vadd.f32 %v952_v18, %v726_v54 }
 0x1a2   : > { %780 = vst [vmem:[%s1544_s13 + $0x8] sm:$0xff] %v772_v55 }
 0x1a3   : > { %779 = vst [vmem:[%s1544_s13] sm:$0xff] %v771_v56 }
 0x1ad   : > { %v1013_v57 = vpop.f32.mrb[2].mxu1  ;;  %v1041_v58 = vpop.f32.mrb[2].mxu0 }
 0x1ae   : > { %v741_v59 = vadd.f32 %v1041_v58, %v1013_v57  ;;  %v606_v60 = vpop.f32.mrb[3].mxu1  ;;  %v735_v61 = vpop.f32.mrb[3].mxu0 }
 0x1af   : > { %v736_v17 = vadd.f32 %v735_v61, %v606_v60 }
 0x1b0   : > { %v774_v16 = vadd.f32 %v952_v18, %v741_v59 }
 0x1b1   : > { %v773_v62 = vadd.f32 %v952_v18, %v736_v17 }
 0x1b2   : > { %782 = vst [vmem:[%s1544_s13 + $0x18] sm:$0xff] %v774_v16 }
 0x1b3   : > { %781 = vst [vmem:[%s1544_s13 + $0x10] sm:$0xff] %v773_v62 }
 0x1bd   : > { %v1016_v63 = vpop.f32.mrb[4].mxu1  ;;  %v1044_v3 = vpop.f32.mrb[4].mxu0 }
 0x1be   : > { %v751_v4 = vadd.f32 %v1044_v3, %v1016_v63  ;;  %v616_v6 = vpop.f32.mrb[5].mxu1  ;;  %v745_v7 = vpop.f32.mrb[5].mxu0 }
 0x1bf   : > { %v746_v8 = vadd.f32 %v745_v7, %v616_v6 }
 0x1c0   : > { %v776_v21 = vadd.f32 %v952_v18, %v751_v4 }
 0x1c1   : > { %v775_v20 = vadd.f32 %v952_v18, %v746_v8 }
 0x1c2   : > { %784 = vst [vmem:[%s1544_s13 + $0x28] sm:$0xff] %v776_v21 }
 0x1c3   : > { %783 = vst [vmem:[%s1544_s13 + $0x20] sm:$0xff] %v775_v20 }
 0x1cd   : > { %v1019_v11 = vpop.f32.mrb[6].mxu1  ;;  %v1047_v12 = vpop.f32.mrb[6].mxu0 }
 0x1ce   : > { %v761_v13 = vadd.f32 %v1047_v12, %v1019_v11  ;;  %v626_v14 = vpop.f32.mrb[7].mxu1  ;;  %v755_v15 = vpop.f32.mrb[7].mxu0 }
 0x1cf   : > { %v756_v22 = vadd.f32 %v755_v15, %v626_v14 }
 0x1d0   : > { %v778_v23 = vadd.f32 %v952_v18, %v761_v13 }
 0x1d1   : > { %v777_v24 = vadd.f32 %v952_v18, %v756_v22 }
 0x1d2   : > { %786 = vst [vmem:[%s1544_s13 + $0x38] sm:$0xff] %v778_v23 }
 0x1d3   : > { %785 = vst [vmem:[%s1544_s13 + $0x30] sm:$0xff] %v777_v24 }
 0x1d4   : > { %1174 = shalt.err (!%p1171_p5)
}
 0x1d5   : > { %s1175_s8 = scalar_lea.hbm %s1557_s26, 1024  ;;  %s1179_s10 = scalar_lea.hbm %s1615_s4, 2048 }
 0x1d6   : > { %p1176_p6 = scmp.ne.s32.totalorder %s1557_s26, %s1175_s8  ;;  %p1180_p10 = scmp.lt.u32.totalorder %s1557_s26, %s1615_s4 }
 0x1d7   : > { %p1181_p11 = scmp.lt.u32.totalorder %s1179_s10, %s1175_s8  ;;  %p1183_p13 = scmp.lt.u32.totalorder %s1175_s8, %s1557_s26 }
 0x1d8   : > { %p1177_p7 = pnand %p1176_p6, %p1309_p4 }
 0x1d9   : > { %p1182_p12 = por %p1181_p11, %p1180_p10 }
 0x1da   : > { %p1178_p9 = pneg %p1177_p7 }
 0x1db   : > { %p1184_p0 = por %p1183_p13, %p1182_p12 }
 0x1dd   : > { %p1185_p1 = pnand %p1184_p0, %p1178_p9 }
 0x1df   : > { %1188 = shalt.err (!%p1185_p1)
}
 0x1e0   : > { %s1242_s13 = smov 128   ;;  %s1243_s14 = smov 8  }
 0x1e1   : > { %1088 = dma.vmem_to_hbm [thread:$0]  (%p1309_p4), %s1559_s21, 1024, %s1557_s26, %s1565_s18, %s1242_s13, %s1242_s13, %s1243_s14  }
 0x1e2 PF: > { %p1094_p2 = scmp.ge.s32.totalorder %s1239_s20, 2  ;;  %s817_s22 = sand.u32 1, %s1219_s15  }
 0x1e3   : > { %s818_s24 = scalar_lea.sflag [#allocation3], %s817_s22 }
 0x1e4   : > { %p1091_p3 = pnand %p1094_p2, %p1316_p8 }
 0x1e6   : > { %1214 = dma.done.wait (!%p1091_p3), %s818_s24, 1024  }
 0x1e7   : > { %1216 = vsyncadd (!%p1091_p3), %s818_s24, 4294966272  ;;  %s17_s20 = sadd.s32 1, %s1239_s20   ;;  %s1618_s15 = smov %s1223_s16 }
 0x1e8   : > { %p14_p5 = scmp.ge.s32.totalorder %s17_s20, 4   ;;  %s1619_s16 = smov %s1227_s17 }
 0x1e9   : > { %s1620_s17 = smov %s1322_s28  ;;  %s1621_s18 = smov %s1235_s19 }
 0x1ea   : > { %s1622_s19 = smov %s1624_s23  ;;  %16 = sbr.rel (!%p14_p5) target bundleno = 4 (0x4), region = 81 }
 0x1f1   :  { %823 = vsyncpa [#allocation3], 1 }
 0x1f2   :  { %825 = vsyncpa [#allocation3 + $0x1], 1 }

</bundles_post_ra>
